<compile_context>
chip_gen: v5e
topology: v5e:2x2
jax: 0.10.0
libtpu: 0.0.40
codegen_flags: <defaults>
</compile_context>

<pallas_src>
import jax
import jax.numpy as jnp
from jax import lax
from jax.experimental import pallas as pl
from jax.experimental.pallas import tpu as pltpu

TAU = 0.05
BIG_POSITIVE = 1.0e10
COS_EPS = 1e-8                      # matches F.cosine_similarity default eps

_ROW_PAD = 256                      # each half padded to a multiple of this
_VMEM_LIMIT = 48 * 1024 * 1024      # <= ~56 MiB so it also fits v7x's 64 MiB


def _round_up(x, m):
    return ((x + m - 1) // m) * m


def _pick_tiles():
    """Per-generation (TM, TN): v5e keeps TM=128 (4x 128x128 MXUs); v6e/v7x
    use TM=256 to fill the 256-wide MXU and halve column-panel re-reads."""
    try:
        kind = jax.devices()[0].device_kind.lower()
    except Exception:
        kind = ""
    if "v5" in kind and ("lite" in kind or "5e" in kind):
        return 128, 256
    return 256, 256


def _normalize_kernel(x_ref, xn_ref):
    """Row-wise L2 normalization of a (TMN, d) slab; bf16 output."""
    x = x_ref[...].astype(jnp.float32)
    sumsq = jnp.sum(x * x, axis=-1, keepdims=True)
    # max(||x||, eps) == sqrt(max(sumsq, eps^2)); rsqrt goes to the EUP.
    inv_norm = lax.rsqrt(jnp.maximum(sumsq, jnp.float32(COS_EPS * COS_EPS)))
    xn_ref[...] = (x * inv_norm).astype(xn_ref.dtype)


def _make_logits_ce_kernel(b, b_pad, n_pad, tm, tn, tau):
    inv_tau = float(1.0 / tau)
    neg_big = float(-BIG_POSITIVE)
    num_row_tiles = n_pad // tm
    num_col_tiles = n_pad // tn
    half_tm_tiles = b_pad // tm

    # Static column-tile ranges that contain padded (masked-out) columns:
    # pad columns live in [b, b_pad) and [b_pad + b, n_pad).
    has_pad = b < b_pad
    pad1_lo, pad1_hi = b // tn, (b_pad - 1) // tn
    pad2_lo = (b_pad + b) // tn

    def kernel(xn_row_ref, xn_col_ref, w_ref, logits_ref, wce_ref,
               m_sc, l_sc, t_sc):
        i = pl.program_id(0)
        j = pl.program_id(1)

        @pl.when(j == 0)
        def _():
            # -inf init is safe because masked logits are finite (-1e10).
            m_sc[...] = jnp.full((tm, 1), -jnp.inf, jnp.float32)
            l_sc[...] = jnp.zeros((tm, 1), jnp.float32)

        xn_row = xn_row_ref[...]                 # (tm, d) bf16
        xn_col = xn_col_ref[...]                 # (tn, d) bf16

        # Cosine similarities on the MXU: contract the feature dim directly
        # (no explicit transpose), accumulate in f32.
        sim = lax.dot_general(
            xn_row, xn_col,
            dimension_numbers=(((1,), (1,)), ((), ())),
            preferred_element_type=jnp.float32,
        )                                         # (tm, tn) f32

        # ---- Target logit: the partner columns of this row tile land in
        # exactly one column tile (b_pad % tm == 0 and tm | tn), so read them
        # off this sim tile instead of streaming a third xn input.
        partner_tm = jnp.where(i < half_tm_tiles,
                               i + half_tm_tiles, i - half_tm_tiles)
        j_tgt = partner_tm * tm // tn

        @pl.when(j == j_tgt)
        def _():
            row_g = i * tm + lax.broadcasted_iota(jnp.int32, (tm, tn), 0)
            col_g = j * tn + lax.broadcasted_iota(jnp.int32, (tm, tn), 1)
            offset = jnp.where(i < half_tm_tiles, b_pad, -b_pad).astype(jnp.int32)
            is_tgt = col_g == row_g + offset
            t_sc[...] = (jnp.sum(jnp.where(is_tgt, sim, 0.0),
                                 axis=-1, keepdims=True)
                         * jnp.float32(inv_tau))

        # ---- Logits writeback + online (flash-style) log-sum-exp.
        def _store_and_lse(logits):
            logits_ref[...] = logits.astype(logits_ref.dtype)
            m_prev = m_sc[...]
            m_new = jnp.maximum(m_prev, jnp.max(logits, axis=-1, keepdims=True))
            l_sc[...] = (l_sc[...] * jnp.exp(m_prev - m_new)
                         + jnp.sum(jnp.exp(logits - m_new),
                                   axis=-1, keepdims=True))
            m_sc[...] = m_new

        # Masking is only needed on the tile holding this row tile's diagonal
        # and on the (static) boundary tiles that contain padded columns.
        j_diag = i * tm // tn
        needs_mask = j == j_diag
        if has_pad:
            needs_mask = jnp.logical_or(
                needs_mask, jnp.logical_and(j >= pad1_lo, j <= pad1_hi))
            needs_mask = jnp.logical_or(needs_mask, j >= pad2_lo)

        @pl.when(needs_mask)
        def _():
            row_g = i * tm + lax.broadcasted_iota(jnp.int32, (tm, tn), 0)
            col_g = j * tn + lax.broadcasted_iota(jnp.int32, (tm, tn), 1)
            masked = col_g == row_g
            if has_pad:
                col_is_pad = jnp.logical_or(
                    jnp.logical_and(col_g >= b, col_g < b_pad),
                    col_g >= b_pad + b)
                masked = jnp.logical_or(masked, col_is_pad)
            _store_and_lse(jnp.where(masked, jnp.float32(neg_big),
                                     sim * jnp.float32(inv_tau)))

        @pl.when(jnp.logical_not(needs_mask))
        def _():
            _store_and_lse(sim * jnp.float32(inv_tau))

        @pl.when(j == num_col_tiles - 1)
        def _():
            lse = m_sc[...] + jnp.log(l_sc[...])
            wce_ref[...] = w_ref[...] * (lse - t_sc[...])

    return kernel


def simsce_layer(batch_feat1, batch_feat2, input_mask=None, tau=TAU,
                 logits_dtype=jnp.float32):
    """Pallas implementation of SimSceLayer.forward -> (loss, logits, y_true).

    `logits_dtype=jnp.bfloat16` halves logits HBM writeback / store pressure
    (recommended on v5e/v6e); default float32 matches the PyTorch module.
    """
    b, d = batch_feat1.shape
    f32 = jnp.float32
    tm, tn = _pick_tiles()

    b_pad = _round_up(b, _ROW_PAD)       # pad each half so all tiles divide
    n = 2 * b
    n_pad = 2 * b_pad
    num_row_tiles = n_pad // tm
    num_col_tiles = n_pad // tn
    # Invariants the kernel relies on (re-assert if tiles are retuned).
    assert b_pad % tm == 0 and tn % tm == 0 and n_pad % tn == 0
    assert num_row_tiles % 2 == 0        # even split over v7x's 2 TensorCores

    # Row-padded, concatenated input; pad rows are exact zeros so their
    # normalized embeddings are exactly zero (finite, harmless in the loss).
    # TODO(synk): fuse this pad/concat into the normalize pass (per-half
    # aliased writes) to save one (n_pad, d) f32 HBM round trip.
    x = (jnp.zeros((n_pad, d), f32)
         .at[:b].set(batch_feat1.astype(f32))
         .at[b_pad:b_pad + b].set(batch_feat2.astype(f32)))

    # Pass 1: row-tiled L2 normalization -> bf16 xn.  Purely HBM-bound, so use
    # a large row tile (shrinks for huge feature dims to stay inside VMEM).
    tmn = 256 if 256 * d * 12 <= 40 * 1024 * 1024 else 128
    # TODO(synk): for extremely large feature dims, additionally tile the
    # feature (contraction) axis of both passes.
    xn = pl.pallas_call(
        _normalize_kernel,
        out_shape=jax.ShapeDtypeStruct((n_pad, d), jnp.bfloat16),
        grid_spec=pltpu.PrefetchScalarGridSpec(
            num_scalar_prefetch=0,
            grid=(n_pad // tmn,),
            in_specs=[pl.BlockSpec((tmn, d), lambda i: (i, 0))],
            out_specs=pl.BlockSpec((tmn, d), lambda i: (i, 0)),
        ),
        compiler_params=pltpu.CompilerParams(
            dimension_semantics=("parallel",),
            vmem_limit_bytes=_VMEM_LIMIT,
        ),
    )(x)

    # Per-sample CE weight: F.cross_entropy(..., weight=w) with these targets
    # reduces to sum_i w[y_i]*ce_i / sum_i w[y_i], w[y_i] = 1 - mask[i mod b].
    if input_mask is not None:
        w_half = 1.0 - input_mask.astype(f32)
    else:
        w_half = jnp.ones((b,), f32)
    w_half = jnp.zeros((b_pad,), f32).at[:b].set(w_half)   # padded rows -> 0
    sample_w = jnp.concatenate([w_half, w_half], axis=0).reshape(n_pad, 1)

    kernel = _make_logits_ce_kernel(b, b_pad, n_pad, tm, tn, tau)

    logits_pad, wce = pl.pallas_call(
        kernel,
        out_shape=(
            jax.ShapeDtypeStruct((n_pad, n_pad), logits_dtype),
            jax.ShapeDtypeStruct((n_pad, 1), jnp.float32),
        ),
        grid_spec=pltpu.PrefetchScalarGridSpec(
            num_scalar_prefetch=0,
            grid=(num_row_tiles, num_col_tiles),
            in_specs=[
                # row slab of xn
                pl.BlockSpec((tm, d), lambda i, j: (i, 0)),
                # column slab of xn (reduction over j builds the full LSE);
                # add pipeline_mode=pl.Buffered(3) here if a profile shows the
                # column DMA exposed at large d.
                pl.BlockSpec((tn, d), lambda i, j: (j, 0)),
                # per-row CE weight
                pl.BlockSpec((tm, 1), lambda i, j: (i, 0)),
            ],
            out_specs=[
                pl.BlockSpec((tm, tn), lambda i, j: (i, j)),   # lane-dense logits
                pl.BlockSpec((tm, 1), lambda i, j: (i, 0)),    # weighted CE / row
            ],
            scratch_shapes=[
                pltpu.VMEM((tm, 1), jnp.float32),   # running max
                pltpu.VMEM((tm, 1), jnp.float32),   # running sum-exp
                pltpu.VMEM((tm, 1), jnp.float32),   # target logit
            ],
        ),
        compiler_params=pltpu.CompilerParams(
            dimension_semantics=("parallel", "arbitrary"),
            vmem_limit_bytes=_VMEM_LIMIT,
        ),
    )(xn, xn, sample_w)

    loss = jnp.sum(wce) / jnp.sum(sample_w)

    # Recover the (2b, 2b) logits with contiguous slices + concats (no gather).
    if b_pad == b:
        logits = logits_pad
    else:
        tl = lax.slice(logits_pad, (0, 0), (b, b))
        tr = lax.slice(logits_pad, (0, b_pad), (b, b_pad + b))
        bl = lax.slice(logits_pad, (b_pad, 0), (b_pad + b, b))
        br = lax.slice(logits_pad, (b_pad, b_pad), (b_pad + b, b_pad + b))
        logits = jnp.concatenate(
            [jnp.concatenate([tl, tr], axis=1),
             jnp.concatenate([bl, br], axis=1)], axis=0)

    idx = jnp.arange(b, dtype=jnp.int32)
    y_true = jnp.concatenate([idx + b, idx], axis=0)
    return loss, logits, y_true


def _reference_loss(batch_feat1, batch_feat2, input_mask=None, tau=TAU):
    """Pure-JAX f32 reference of SimSceLayer.forward (loss only)."""
    x = jnp.concatenate([batch_feat1, batch_feat2], axis=0).astype(jnp.float32)
    nn = x.shape[0]
    bb = nn // 2
    norm = jnp.maximum(jnp.linalg.norm(x, axis=-1, keepdims=True), COS_EPS)
    xn = x / norm
    logits = (xn @ xn.T) / tau - jnp.eye(nn, dtype=jnp.float32) * BIG_POSITIVE
    idx = jnp.arange(bb)
    y_true = jnp.concatenate([idx + bb, idx])
    lse = jax.scipy.special.logsumexp(logits, axis=-1)
    ce = lse - logits[jnp.arange(nn), y_true]
    if input_mask is not None:
        w = 1.0 - jnp.concatenate([input_mask, input_mask]).astype(jnp.float32)
    else:
        w = jnp.ones((nn,), jnp.float32)
    return jnp.sum(w * ce) / jnp.sum(w)


if __name__ == "__main__":
    key = jax.random.PRNGKey(0)
    k1, k2 = jax.random.split(key)
    b, feat = 8, 32
    batch_feat1 = jax.random.normal(k1, (b, feat), dtype=jnp.float32)
    batch_feat2 = jax.random.normal(k2, (b, feat), dtype=jnp.float32)

    loss, logits, y_true = simsce_layer(batch_feat1, batch_feat2, input_mask=None)
    jax.block_until_ready((loss, logits, y_true))
    assert logits.shape == (2 * b, 2 * b) and y_true.shape == (2 * b,)
    assert bool(jnp.isfinite(loss))
    ref = _reference_loss(batch_feat1, batch_feat2)
    # bf16-normalized embeddings -> loose tolerance vs f32 reference.
    assert abs(float(loss) - float(ref)) < 0.25, (float(loss), float(ref))

    # input_mask path (mask out one example pair).
    input_mask = jnp.zeros((b,), dtype=jnp.int32).at[0].set(1)
    loss_m, logits_m, y_true_m = simsce_layer(batch_feat1, batch_feat2, input_mask)
    jax.block_until_ready((loss_m, logits_m, y_true_m))
    ref_m = _reference_loss(batch_feat1, batch_feat2, input_mask)
    assert abs(float(loss_m) - float(ref_m)) < 0.25, (float(loss_m), float(ref_m))

    # bf16 logits output (HBM / store-slot saver, mainly for v5e / v6e).
    loss_b, logits_b, _ = simsce_layer(batch_feat1, batch_feat2,
                                       logits_dtype=jnp.bfloat16)
    jax.block_until_ready((loss_b, logits_b))
    assert logits_b.dtype == jnp.bfloat16
    assert bool(jnp.isfinite(loss_b))

    print("KERNEL_OK")
</pallas_src>

<mosaic_0001>
module attributes {stable_mosaic.version = 11 : i64} {
  func.func @_normalize_kernel(%arg0: i32, %arg1: memref<256x32xf32, #tpu.memory_space<vmem>>, %arg2: memref<256x32xbf16, #tpu.memory_space<vmem>>) attributes {dimension_semantics = [#tpu.dimension_semantics<parallel>], iteration_bounds = array<i64: 2>, scalar_prefetch = 0 : i64, scratch_operands = 0 : i64, tpu.core_type = #tpu.core_type<tc>, window_params = [{transform_indices = @transform_0, window_bounds = array<i64: 256, 32>}, {transform_indices = @transform_1, window_bounds = array<i64: 256, 32>}]} {
    %c0 = arith.constant 0 : index
    %c0_0 = arith.constant 0 : index
    %0 = vector.load %arg1[%c0, %c0_0] : memref<256x32xf32, #tpu.memory_space<vmem>>, vector<256x32xf32>
    %1 = arith.mulf %0, %0 : vector<256x32xf32>
    %cst = arith.constant dense<0.000000e+00> : vector<256xf32>
    %2 = vector.multi_reduction <add>, %1, %cst [1] : vector<256x32xf32> to vector<256xf32>
    %3 = vector.shape_cast %2 : vector<256xf32> to vector<256x1xf32>
    %cst_1 = arith.constant 1.000000e-16 : f32
    %4 = vector.broadcast %cst_1 : f32 to vector<256x1xf32>
    %5 = arith.maximumf %3, %4 : vector<256x1xf32>
    %6 = math.rsqrt %5 : vector<256x1xf32>
    %7 = vector.broadcast %6 : vector<256x1xf32> to vector<256x32xf32>
    %8 = arith.mulf %0, %7 : vector<256x32xf32>
    %9 = arith.truncf %8 : vector<256x32xf32> to vector<256x32xbf16>
    %c0_2 = arith.constant 0 : index
    %c0_3 = arith.constant 0 : index
    %10 = vector.load %arg2[%c0_2, %c0_3] : memref<256x32xbf16, #tpu.memory_space<vmem>>, vector<256x32xbf16>
    tpu.vector_store %arg2[%c0_2, %c0_3], %9 {strides = array<i32>} : memref<256x32xbf16, #tpu.memory_space<vmem>>, vector<256x32xbf16>,
    return
  }
  func.func @transform_0(%arg0: i32) -> (i32, i32) {
    %c0_i32 = arith.constant 0 : i32
    %c0_i32_0 = arith.constant 0 : i32
    return %arg0, %c0_i32 : i32, i32
  }
  func.func @transform_1(%arg0: i32) -> (i32, i32) {
    %c0_i32 = arith.constant 0 : i32
    %c0_i32_0 = arith.constant 0 : i32
    return %arg0, %c0_i32 : i32, i32
  }
}

</mosaic_0001>

<bundles_post_ra>
// kernel: tpu_custom_call.1
= control target key start
LH: loop header
LB: loop body
LE: loop exit
PB: predicated region body
PF: predicated region fallthrough
CT: control target
= control target key end

     0   :  { %s890_s6 = smov 0   ;;  %s1634_s0 = inlined_call_operand.vmem [shape: f32[512,32], index: 0, kind: input, shape index: {}]   ;;  %s1635_s1 = inlined_call_operand.vmem [shape: bf16[512,32], index: 1, kind: output, shape index: {}]  }
   0x1 LB: > { %s786_s7 = sadd.s32 4294967295, %s878_s6   ;;  %p790_p0 = scmp.ge.s32.totalorder %s878_s6, 1  ;;  %s878_s6 = sphi %s890_s6, %s11_s6  }
   0x2   : > { %p88_p1 = scmp.lt.s32.totalorder %s878_s6, 3 }
   0x4   : > { %p89_p2 = pnand %p790_p0, %p88_p1 }
   0x5   : > { %s791_s8 = sshll.u32 (!%p89_p2), %s786_s7, 5 }
   0x6   : > { %92 = sbr.rel (%p89_p2) target bundleno = 249 (0xf9), region = 24  ;;  %p109_p3 = scmp.lt.s32.totalorder (!%p89_p2), %s791_s8, 63 }
   0xb   : > { %s1637_s8 = smov (!%p109_p3, %s791_s8), 63  ;;  %vm184_vm0 = vcmask 261120   ;;  %vm697_vm1 = vcmask 257024  }
   0xc   : > { %s792_s9 = sshll.u32 %s1637_s8, 3  ;;  %s794_s13 = sshll.u32 %s1637_s8, 2 }
   0xd   : > { %s904_s12 = scalar_lea.vmem %s1634_s0, %s792_s9  ;;  %s1127_s16 = scalar_lea.vmem %s1635_s1, %s794_s13 }
   0xe   : > { %v907_v0 = vld [vmem:[%s904_s12 + $0x20] sm:$0xff]  ;;  %v910_v1 = vld [vmem:[%s904_s12 + $0x10] sm:$0xff]  ;;  %v922_v6 = vld [vmem:[%s904_s12 + $0x28] sm:$0xff] }
   0xf   : > { %v913_v2 = vld [vmem:[%s904_s12] sm:$0xff]  ;;  %v156_v3 = vmul.f32 %v907_v0, %v907_v0  ;;  %v154_v4 = vmul.f32 %v910_v1, %v910_v1  ;;  %v925_v7 = vld [vmem:[%s904_s12 + $0x18] sm:$0xff]  ;;  %v931_v11 = vld [vmem:[%s904_s12 + $0x8] sm:$0xff]  ;;  %v157_v12 = vmul.f32 %v922_v6, %v922_v6 }
  0x10   : > { %v152_v5 = vmul.f32 %v913_v2, %v913_v2  ;;  %v155_v13 = vmul.f32 %v925_v7, %v925_v7  ;;  %v153_v14 = vmul.f32 %v931_v11, %v931_v11  ;;  %v943_v18 = vld [vmem:[%s904_s12 + $0x40] sm:$0xff]  ;;  %v946_v19 = vld [vmem:[%s904_s12 + $0x38] sm:$0xff]  ;;  %v949_v20 = vld [vmem:[%s904_s12 + $0x30] sm:$0xff] }
  0x11   : > { %v197_v8 = vsel %vm184_vm0, %v156_v3, 0.0  ;;  %v191_v9 = vsel %vm184_vm0, %v154_v4, 0.0  ;;  %v200_v15 = vsel %vm184_vm0, %v157_v12, 0.0  ;;  %v160_v21 = vmul.f32 %v943_v18, %v943_v18  ;;  %v961_v27 = vld [vmem:[%s904_s12 + $0x58] sm:$0xff]  ;;  %v964_v28 = vld [vmem:[%s904_s12 + $0x50] sm:$0xff]  ;;  %v967_v29 = vld [vmem:[%s904_s12 + $0x48] sm:$0xff] }
  0x12   : > { %v185_v10 = vsel %vm184_vm0, %v152_v5, 0.0  ;;  %198 = vadd.xlane.f32.xlu2 %v197_v8  ;;  %192 = vadd.xlane.f32.xlu1 %v191_v9  ;;  %v194_v16 = vsel %vm184_vm0, %v155_v13, 0.0  ;;  %v188_v17 = vsel %vm184_vm0, %v153_v14, 0.0  ;;  %v159_v22 = vmul.f32 %v946_v19, %v946_v19  ;;  %v979_v36 = vld [vmem:[%s904_s12 + $0x70] sm:$0xff]  ;;  %v982_v37 = vld [vmem:[%s904_s12 + $0x68] sm:$0xff]  ;;  %v985_v38 = vld [vmem:[%s904_s12 + $0x60] sm:$0xff] }
  0x13   : > { %186 = vadd.xlane.f32.xlu0 %v185_v10  ;;  %v158_v23 = vmul.f32 %v949_v20, %v949_v20  ;;  %v209_v24 = vsel %vm184_vm0, %v160_v21, 0.0  ;;  %v163_v30 = vmul.f32 %v961_v27, %v961_v27  ;;  %v162_v31 = vmul.f32 %v964_v28, %v964_v28  ;;  %v997_v45 = vld [vmem:[%s904_s12 + $0x88] sm:$0xff]  ;;  %v1000_v46 = vld [vmem:[%s904_s12 + $0x80] sm:$0xff]  ;;  %v1003_v47 = vld [vmem:[%s904_s12 + $0x78] sm:$0xff] }
  0x14   : > { %v206_v25 = vsel %vm184_vm0, %v159_v22, 0.0  ;;  %v161_v32 = vmul.f32 %v967_v29, %v967_v29  ;;  %v166_v39 = vmul.f32 %v979_v36, %v979_v36  ;;  %v165_v40 = vmul.f32 %v982_v37, %v982_v37  ;;  %v1015_v54 = vld [vmem:[%s904_s12 + $0xa0] sm:$0xff]  ;;  %v1018_v55 = vld [vmem:[%s904_s12 + $0x98] sm:$0xff]  ;;  %v1021_v56 = vld [vmem:[%s904_s12 + $0x90] sm:$0xff] }
  0x15   : > { %v203_v26 = vsel %vm184_vm0, %v158_v23, 0.0  ;;  %v218_v33 = vsel %vm184_vm0, %v163_v30, 0.0  ;;  %v215_v34 = vsel %vm184_vm0, %v162_v31, 0.0  ;;  %v164_v41 = vmul.f32 %v985_v38, %v985_v38  ;;  %v1033_v63 = vld [vmem:[%s904_s12 + $0xb8] sm:$0xff]  ;;  %v1036_v3 = vld [vmem:[%s904_s12 + $0xb0] sm:$0xff]  ;;  %v1039_v4 = vld [vmem:[%s904_s12 + $0xa8] sm:$0xff] }
  0x16   : > { %v212_v35 = vsel %vm184_vm0, %v161_v32, 0.0  ;;  %v227_v42 = vsel %vm184_vm0, %v166_v39, 0.0  ;;  %v224_v43 = vsel %vm184_vm0, %v165_v40, 0.0  ;;  %v169_v48 = vmul.f32 %v997_v45, %v997_v45  ;;  %v1051_v14 = vld [vmem:[%s904_s12 + $0xd0] sm:$0xff]  ;;  %v1072_v30 = vld [vmem:[%s904_s12 + $0xe0] sm:$0xff]  ;;  %v147_v31 = vld [vmem:[%s904_s12 + $0xd8] sm:$0xff] }
  0x17   : > { %v221_v44 = vsel %vm184_vm0, %v164_v41, 0.0  ;;  %v168_v49 = vmul.f32 %v1000_v46, %v1000_v46  ;;  %v167_v50 = vmul.f32 %v1003_v47, %v1003_v47  ;;  %v172_v57 = vmul.f32 %v1015_v54, %v1015_v54  ;;  %v151_v41 = vld [vmem:[%s904_s12 + $0xf8] sm:$0xff] }
  0x18   : > { %v236_v51 = vsel %vm184_vm0, %v169_v48, 0.0  ;;  %v171_v58 = vmul.f32 %v1018_v55, %v1018_v55  ;;  %v170_v59 = vmul.f32 %v1021_v56, %v1021_v56  ;;  %v175_v5 = vmul.f32 %v1033_v63, %v1033_v63 }
  0x19   : > { %v233_v52 = vsel %vm184_vm0, %v168_v49, 0.0  ;;  %v230_v53 = vsel %vm184_vm0, %v167_v50, 0.0  ;;  %v245_v60 = vsel %vm184_vm0, %v172_v57, 0.0  ;;  %v174_v8 = vmul.f32 %v1036_v3, %v1036_v3 }
  0x1a   : > { %201 = vadd.xlane.f32.xlu2 %v200_v15  ;;  %195 = vadd.xlane.f32.xlu1 %v194_v16  ;;  %v242_v61 = vsel %vm184_vm0, %v171_v58, 0.0  ;;  %v239_v62 = vsel %vm184_vm0, %v170_v59, 0.0  ;;  %v173_v9 = vmul.f32 %v1039_v4, %v1039_v4  ;;  %v254_v10 = vsel %vm184_vm0, %v175_v5, 0.0  ;;  %v1054_v15 = vld [vmem:[%s904_s12 + $0xc8] sm:$0xff]  ;;  %v1057_v16 = vld [vmem:[%s904_s12 + $0xc0] sm:$0xff] }
  0x1b   : > { %189 = vadd.xlane.f32.xlu0 %v188_v17  ;;  %v251_v12 = vsel %vm184_vm0, %v174_v8, 0.0  ;;  %v178_v17 = vmul.f32 %v1051_v14, %v1051_v14  ;;  %v177_v21 = vmul.f32 %v1054_v15, %v1054_v15  ;;  %v176_v22 = vmul.f32 %v1057_v16, %v1057_v16 }
  0x1c   : > { %v248_v13 = vsel %vm184_vm0, %v173_v9, 0.0 }
  0x1d   : > { %v263_v23 = vsel %vm184_vm0, %v178_v17, 0.0 }
  0x22   : > { %210 = vadd.xlane.f32.xlu2 %v209_v24  ;;  %207 = vadd.xlane.f32.xlu1 %v206_v25  ;;  %v260_v24 = vsel %vm184_vm0, %v177_v21, 0.0  ;;  %v257_v25 = vsel %vm184_vm0, %v176_v22, 0.0 }
  0x23   : > { %204 = vadd.xlane.f32.xlu0 %v203_v26  ;;  %v1069_v26 = vld [vmem:[%s904_s12 + $0xe8] sm:$0xff] }
  0x24   : > { %v181_v32 = vmul.f32 %v1069_v26, %v1069_v26 }
  0x2a   : > { %219 = vadd.xlane.f32.xlu2 %v218_v33  ;;  %216 = vadd.xlane.f32.xlu1 %v215_v34  ;;  %v180_v33 = vmul.f32 %v1072_v30, %v1072_v30  ;;  %v179_v34 = vmul.f32 %v147_v31, %v147_v31 }
  0x2b   : > { %213 = vadd.xlane.f32.xlu0 %v212_v35  ;;  %v272_v35 = vsel %vm184_vm0, %v181_v32, 0.0 }
  0x2c   : > { %v269_v39 = vsel %vm184_vm0, %v180_v33, 0.0  ;;  %v266_v40 = vsel %vm184_vm0, %v179_v34, 0.0 }
  0x32   : > { %228 = vadd.xlane.f32.xlu2 %v227_v42  ;;  %225 = vadd.xlane.f32.xlu1 %v224_v43  ;;  %v150_v42 = vld [vmem:[%s904_s12 + $0xf0] sm:$0xff]  ;;  %v183_v43 = vmul.f32 %v151_v41, %v151_v41 }
  0x33   : > { %222 = vadd.xlane.f32.xlu0 %v221_v44  ;;  %v182_v44 = vmul.f32 %v150_v42, %v150_v42 }
  0x34   : > { %v278_v48 = vsel %vm184_vm0, %v183_v43, 0.0 }
  0x35   : > { %v275_v49 = vsel %vm184_vm0, %v182_v44, 0.0 }
  0x3a   : > { %237 = vadd.xlane.f32.xlu2 %v236_v51  ;;  %234 = vadd.xlane.f32.xlu1 %v233_v52 }
  0x3b   : > { %231 = vadd.xlane.f32.xlu0 %v230_v53 }
  0x42   : > { %246 = vadd.xlane.f32.xlu2 %v245_v60  ;;  %243 = vadd.xlane.f32.xlu1 %v242_v61 }
  0x43   : > { %240 = vadd.xlane.f32.xlu0 %v239_v62 }
  0x4a   : > { %255 = vadd.xlane.f32.xlu2 %v254_v10  ;;  %252 = vadd.xlane.f32.xlu1 %v251_v12 }
  0x4b   : > { %249 = vadd.xlane.f32.xlu0 %v248_v13 }
  0x52   : > { %264 = vadd.xlane.f32.xlu2 %v263_v23  ;;  %261 = vadd.xlane.f32.xlu1 %v260_v24 }
  0x53   : > { %258 = vadd.xlane.f32.xlu0 %v257_v25 }
  0x5a   : > { %273 = vadd.xlane.f32.xlu2 %v272_v35  ;;  %270 = vadd.xlane.f32.xlu1 %v269_v39 }
  0x5b   : > { %267 = vadd.xlane.f32.xlu0 %v266_v40 }
  0x62   : > { %279 = vadd.xlane.f32.xlu1 %v278_v48 }
  0x63   : > { %276 = vadd.xlane.f32.xlu0 %v275_v49 }
  0x85   : > { %v199_v50 = vpop.xlane.xlu2 %198  ;;  %v193_v51 = vpop.xlane.xlu1 %192 }
  0x86   : > { %v285_v52 = vmax.f32 %v199_v50, 1e-16  ;;  %v283_v53 = vmax.f32 %v193_v51, 1e-16  ;;  %v187_v57 = vpop.xlane.xlu0 %186 }
  0x87   : > { %v281_v58 = vmax.f32 %v187_v57, 1e-16 }
  0x88   : > { %805 = vrsqrt.f32 %v285_v52  ;;  %vm359_vm2 = vweird.f32 %v285_v52  ;;  %vm339_vm3 = vweird.f32 %v283_v53 }
  0x89   : > { %807 = vrsqrt.f32 %v283_v53  ;;  %vm319_vm5 = vweird.f32 %v281_v58 }
  0x8a   : > { %809 = vrsqrt.f32 %v281_v58 }
  0x8d   : > { %v202_v59 = vpop.xlane.xlu2 %201  ;;  %v196_v60 = vpop.xlane.xlu1 %195 }
  0x8e   : > { %v806_v61 = vpop.eup %805  ;;  %v1086_v62 = vmax.f32 %v202_v59, 1e-16  ;;  %v1088_v5 = vmax.f32 %v196_v60, 1e-16  ;;  %v190_v8 = vpop.xlane.xlu0 %189 }
  0x8f   : > { %v808_v9 = vpop.eup %807  ;;  %v354_v10 = vmul.f32 %v806_v61, %v285_v52  ;;  %v1090_v12 = vmax.f32 %v190_v8, 1e-16  ;;  %vm360_vm4 = vweird.f32 %v806_v61 }
  0x90   : > { %v810_v13 = vpop.eup %809  ;;  %v334_v17 = vmul.f32 %v808_v9, %v283_v53  ;;  %811 = vrsqrt.f32 %v1086_v62  ;;  %vm340_vm6 = vweird.f32 %v808_v9  ;;  %vm369_vm7 = vweird.f32 %v1086_v62  ;;  %vm361_vm9 = vmor %vm359_vm2, %vm360_vm4 }
  0x91   : > { %v355_v21 = vmul.f32 %v806_v61, %v354_v10  ;;  %v314_v22 = vmul.f32 %v810_v13, %v281_v58  ;;  %813 = vrsqrt.f32 %v1088_v5  ;;  %vm320_vm8 = vweird.f32 %v810_v13  ;;  %vm341_vm10 = vmor %vm339_vm3, %vm340_vm6 }
  0x92   : > { %v335_v23 = vmul.f32 %v808_v9, %v334_v17  ;;  %815 = vrsqrt.f32 %v1090_v12  ;;  %vm321_vm11 = vmor %vm319_vm5, %vm320_vm8  ;;  %vm349_vm12 = vweird.f32 %v1088_v5  ;;  %vm329_vm2 = vweird.f32 %v1090_v12 }
  0x93   : > { %v356_v24 = vmul.f32 0.5, %v355_v21  ;;  %v315_v25 = vmul.f32 %v810_v13, %v314_v22 }
  0x94   : > { %v336_v31 = vmul.f32 0.5, %v335_v23 }
  0x95   : > { %v357_v32 = vsub.f32 1.5, %v356_v24  ;;  %v316_v33 = vmul.f32 0.5, %v315_v25  ;;  %v211_v34 = vpop.xlane.xlu2 %210  ;;  %v208_v35 = vpop.xlane.xlu1 %207 }
  0x96   : > { %v1095_v39 = vpop.eup %811  ;;  %v337_v40 = vsub.f32 1.5, %v336_v31  ;;  %v1098_v41 = vmax.f32 %v211_v34, 1e-16  ;;  %v205_v42 = vpop.xlane.xlu0 %204  ;;  %v1112_v59 = vmax.f32 %v208_v35, 1e-16 }
  0x97   : > { %v1100_v43 = vpop.eup %813  ;;  %v358_v44 = vmul.f32 %v806_v61, %v357_v32  ;;  %v317_v48 = vsub.f32 1.5, %v316_v33  ;;  %v364_v49 = vmul.f32 %v1095_v39, %v1086_v62  ;;  %vm370_vm13 = vweird.f32 %v1095_v39 }
  0x98   : > { %v1104_v50 = vpop.eup %815  ;;  %v338_v51 = vmul.f32 %v808_v9, %v337_v40  ;;  %v344_v57 = vmul.f32 %v1100_v43, %v1088_v5  ;;  %817 = vrsqrt.f32 %v1098_v41  ;;  %vm350_vm14 = vweird.f32 %v1100_v43  ;;  %vm371_vm0 = vmor %vm369_vm7, %vm370_vm13 }
  0x99   : > { %v362_v60 = vsel %vm361_vm9, %v806_v61, %v358_v44  ;;  %v318_v8 = vmul.f32 %v810_v13, %v317_v48  ;;  %v365_v10 = vmul.f32 %v1095_v39, %v364_v49  ;;  %v324_v17 = vmul.f32 %v1104_v50, %v1090_v12  ;;  %vm351_vm3 = vmor %vm349_vm12, %vm350_vm14 }
  0x9a   : > { %v637_v52 = vmul.f32 %v362_v60, %v907_v0  ;;  %v342_v21 = vsel %vm341_vm10, %v808_v9, %v338_v51  ;;  %v345_v22 = vmul.f32 %v1100_v43, %v344_v57  ;;  %819 = vrsqrt.f32 %v1112_v59 }
  0x9b   : > { %v635_v53 = vmul.f32 %v342_v21, %v910_v1  ;;  %v322_v61 = vsel %vm321_vm11, %v810_v13, %v318_v8  ;;  %v366_v23 = vmul.f32 0.5, %v365_v10  ;;  %v325_v0 = vmul.f32 %v1104_v50, %v324_v17 }
  0x9c   : > { %v669_v9 = vpack.c.bf16 %v637_v52, %v637_v52  ;;  %v633_v58 = vmul.f32 %v322_v61, %v913_v2  ;;  %v346_v24 = vmul.f32 0.5, %v345_v22  ;;  %v1139_v2 = vmax.f32 %v205_v42, 1e-16 }
  0x9d   : > { %v667_v25 = vpack.c.bf16 %v635_v53, %v635_v53  ;;  %v367_v31 = vsub.f32 1.5, %v366_v23  ;;  %v326_v32 = vmul.f32 0.5, %v325_v0  ;;  %v220_v33 = vpop.xlane.xlu2 %219  ;;  %v217_v34 = vpop.xlane.xlu1 %216  ;;  %vm330_vm15 = vweird.f32 %v1104_v50 }
  0x9e   : > { %v1134_v1 = vpop.eup %817  ;;  %702 = vst.msk [vmem:[%s1127_s16 + $0x10] sm:$0xf] %vm697_vm1, %v669_v9  ;;  %v665_v13 = vpack.c.bf16 %v633_v58, %v633_v58  ;;  %v347_v35 = vsub.f32 1.5, %v346_v24  ;;  %v214_v40 = vpop.xlane.xlu0 %213  ;;  %821 = vrsqrt.f32 %v1139_v2  ;;  %v1156_v51 = vmax.f32 %v220_v33, 1e-16  ;;  %vm331_vm4 = vmor %vm329_vm2, %vm330_vm15 }
  0x9f   : > { %700 = vst.msk [vmem:[%s1127_s16 + $0x8] sm:$0xf] %vm697_vm1, %v667_v25  ;;  %v368_v44 = vmul.f32 %v1095_v39, %v367_v31  ;;  %v327_v48 = vsub.f32 1.5, %v326_v32  ;;  %v394_v49 = vmul.f32 %v1134_v1, %v1098_v41  ;;  %v1165_v8 = vmax.f32 %v217_v34, 1e-16 }
  0xa0   : > { %698 = vst.msk [vmem:[%s1127_s16] sm:$0xf] %vm697_vm1, %v665_v13  ;;  %v348_v42 = vmul.f32 %v1100_v43, %v347_v35  ;;  %823 = vrsqrt.f32 %v1156_v51  ;;  %vm399_vm5 = vweird.f32 %v1098_v41  ;;  %vm400_vm6 = vweird.f32 %v1134_v1 }
  0xa1   : > { %v372_v57 = vsel %vm371_vm0, %v1095_v39, %v368_v44  ;;  %v328_v60 = vmul.f32 %v1104_v50, %v327_v48  ;;  %v395_v62 = vmul.f32 %v1134_v1, %v394_v49  ;;  %v1172_v39 = vpop.eup %819  ;;  %825 = vrsqrt.f32 %v1165_v8  ;;  %vm401_vm7 = vmor %vm399_vm5, %vm400_vm6 }
  0xa2   : > { %v638_v10 = vmul.f32 %v372_v57, %v922_v6  ;;  %v352_v12 = vsel %vm351_vm3, %v1100_v43, %v348_v42  ;;  %v384_v43 = vmul.f32 %v1172_v39, %v1112_v59  ;;  %vm389_vm8 = vweird.f32 %v1112_v59 }
  0xa3   : > { %v636_v5 = vmul.f32 %v352_v12, %v925_v7  ;;  %v332_v17 = vsel %vm331_vm4, %v1104_v50, %v328_v60  ;;  %v396_v52 = vmul.f32 0.5, %v395_v62  ;;  %v1182_v7 = vmax.f32 %v214_v40, 1e-16 }
  0xa4   : > { %v670_v21 = vpack.c.bf16 %v638_v10, %v638_v10  ;;  %v634_v6 = vmul.f32 %v332_v17, %v931_v11  ;;  %v1184_v23 = vpop.eup %821  ;;  %v385_v11 = vmul.f32 %v1172_v39, %v384_v43  ;;  %vm379_vm9 = vweird.f32 %v1139_v2 }
  0xa5   : > { %v668_v22 = vpack.c.bf16 %v636_v5, %v636_v5  ;;  %v397_v53 = vsub.f32 1.5, %v396_v52  ;;  %v229_v50 = vpop.xlane.xlu2 %228  ;;  %v226_v61 = vpop.xlane.xlu1 %225  ;;  %v374_v25 = vmul.f32 %v1184_v23, %v1139_v2  ;;  %827 = vrsqrt.f32 %v1182_v7 }
  0xa6   : > { %703 = vst.msk [vmem:[%s1127_s16 + $0x14] sm:$0xf] %vm697_vm1, %v670_v21  ;;  %v666_v0 = vpack.c.bf16 %v634_v6, %v634_v6  ;;  %v1189_v9 = vmax.f32 %v229_v50, 1e-16  ;;  %v223_v58 = vpop.xlane.xlu0 %222  ;;  %v1197_v31 = vmax.f32 %v226_v61, 1e-16  ;;  %v1199_v32 = vpop.eup %823  ;;  %vm429_vm10 = vweird.f32 %v1156_v51 }
  0xa7   : > { %701 = vst.msk [vmem:[%s1127_s16 + $0xc] sm:$0xf] %vm697_vm1, %v668_v22  ;;  %v398_v24 = vmul.f32 %v1134_v1, %v397_v53  ;;  %v386_v33 = vmul.f32 0.5, %v385_v11  ;;  %v1210_v34 = vpop.eup %825  ;;  %v375_v35 = vmul.f32 %v1184_v23, %v374_v25  ;;  %v424_v40 = vmul.f32 %v1199_v32, %v1156_v51 }
  0xa8   : > { %699 = vst.msk [vmem:[%s1127_s16 + $0x4] sm:$0xf] %vm697_vm1, %v666_v0  ;;  %829 = vrsqrt.f32 %v1189_v9  ;;  %vm390_vm11 = vweird.f32 %v1172_v39  ;;  %v414_v48 = vmul.f32 %v1210_v34, %v1165_v8  ;;  %vm419_vm12 = vweird.f32 %v1165_v8 }
  0xa9   : > { %v402_v13 = vsel %vm401_vm7, %v1134_v1, %v398_v24  ;;  %v387_v44 = vsub.f32 1.5, %v386_v33  ;;  %v376_v49 = vmul.f32 0.5, %v375_v35  ;;  %v425_v42 = vmul.f32 %v1199_v32, %v424_v40  ;;  %vm391_vm13 = vmor %vm389_vm8, %vm390_vm11 }
  0xaa   : > { %v641_v41 = vmul.f32 %v402_v13, %v943_v18  ;;  %831 = vrsqrt.f32 %v1197_v31  ;;  %v415_v60 = vmul.f32 %v1210_v34, %v414_v48  ;;  %v1226_v18 = vmax.f32 %v223_v58, 1e-16 }
  0xab   : > { %v388_v57 = vmul.f32 %v1172_v39, %v387_v44  ;;  %v1228_v62 = vpop.eup %827  ;;  %v377_v10 = vsub.f32 1.5, %v376_v49  ;;  %vm380_vm14 = vweird.f32 %v1184_v23  ;;  %v426_v12 = vmul.f32 0.5, %v425_v42 }
  0xac   : > { %v673_v1 = vpack.c.bf16 %v641_v41, %v641_v41  ;;  %vm459_vm15 = vweird.f32 %v1189_v9  ;;  %vm430_vm0 = vweird.f32 %v1199_v32  ;;  %v416_v6 = vmul.f32 0.5, %v415_v60  ;;  %vm381_vm3 = vmor %vm379_vm9, %vm380_vm14 }
  0xad   : > { %v238_v5 = vpop.xlane.xlu2 %237  ;;  %v235_v17 = vpop.xlane.xlu1 %234  ;;  %v392_v21 = vsel %vm391_vm13, %v1172_v39, %v388_v57  ;;  %v404_v59 = vmul.f32 %v1228_v62, %v1182_v7  ;;  %vm409_vm2 = vweird.f32 %v1182_v7  ;;  %v378_v53 = vmul.f32 %v1184_v23, %v377_v10  ;;  %vm431_vm5 = vmor %vm429_vm10, %vm430_vm0 }
  0xae   : > { %v1234_v52 = vpop.eup %829  ;;  %706 = vst.msk [vmem:[%s1127_s16 + $0x20] sm:$0xf] %vm697_vm1, %v673_v1  ;;  %v232_v43 = vpop.xlane.xlu0 %231  ;;  %v640_v22 = vmul.f32 %v392_v21, %v946_v19  ;;  %v427_v50 = vsub.f32 1.5, %v426_v12  ;;  %v417_v39 = vsub.f32 1.5, %v416_v6  ;;  %vm420_vm4 = vweird.f32 %v1210_v34 }
  0xaf   : > { %v454_v61 = vmul.f32 %v1234_v52, %v1189_v9  ;;  %v405_v0 = vmul.f32 %v1228_v62, %v404_v59  ;;  %833 = vrsqrt.f32 %v1226_v18  ;;  %v382_v58 = vsel %vm381_vm3, %v1184_v23, %v378_v53  ;;  %vm421_vm6 = vmor %vm419_vm12, %vm420_vm4 }
  0xb0   : > { %v1254_v19 = vpop.eup %831  ;;  %v672_v11 = vpack.c.bf16 %v640_v22, %v640_v22  ;;  %v428_v24 = vmul.f32 %v1199_v32, %v427_v50  ;;  %v639_v2 = vmul.f32 %v382_v58, %v949_v20  ;;  %v418_v33 = vmul.f32 %v1210_v34, %v417_v39 }
  0xb1   : > { %v455_v25 = vmul.f32 %v1234_v52, %v454_v61  ;;  %v406_v13 = vmul.f32 0.5, %v405_v0  ;;  %v444_v35 = vmul.f32 %v1254_v19, %v1197_v31  ;;  %vm410_vm7 = vweird.f32 %v1228_v62 }
  0xb2   : > { %705 = vst.msk [vmem:[%s1127_s16 + $0x1c] sm:$0xf] %vm697_vm1, %v672_v11  ;;  %v432_v23 = vsel %vm431_vm5, %v1199_v32, %v428_v24  ;;  %vm460_vm8 = vweird.f32 %v1234_v52  ;;  %v671_v51 = vpack.c.bf16 %v639_v2, %v639_v2  ;;  %v422_v41 = vsel %vm421_vm6, %v1210_v34, %v418_v33  ;;  %vm411_vm9 = vmor %vm409_vm2, %vm410_vm7 }
  0xb3   : > { %v456_v20 = vmul.f32 0.5, %v455_v25  ;;  %v644_v40 = vmul.f32 %v432_v23, %v961_v27  ;;  %v407_v44 = vsub.f32 1.5, %v406_v13  ;;  %v643_v48 = vmul.f32 %v422_v41, %v964_v28  ;;  %vm461_vm10 = vmor %vm459_vm15, %vm460_vm8 }
  0xb4   : > { %v445_v49 = vmul.f32 %v1254_v19, %v444_v35  ;;  %v1280_v8 = vmax.f32 %v238_v5, 1e-16  ;;  %704 = vst.msk [vmem:[%s1127_s16 + $0x18] sm:$0xf] %vm697_vm1, %v671_v51  ;;  %v1285_v10 = vmax.f32 %v235_v17, 1e-16  ;;  %vm450_vm11 = vweird.f32 %v1254_v19 }
  0xb5   : > { %v457_v32 = vsub.f32 1.5, %v456_v20  ;;  %v247_v42 = vpop.xlane.xlu2 %246  ;;  %v244_v1 = vpop.xlane.xlu1 %243  ;;  %v676_v60 = vpack.c.bf16 %v644_v40, %v644_v40  ;;  %v408_v27 = vmul.f32 %v1228_v62, %v407_v44  ;;  %v1287_v34 = vmax.f32 %v232_v43, 1e-16 }
  0xb6   : > { %v834_v57 = vpop.eup %833  ;;  %v241_v28 = vpop.xlane.xlu0 %240  ;;  %v675_v12 = vpack.c.bf16 %v643_v48, %v643_v48  ;;  %v446_v21 = vmul.f32 0.5, %v445_v49  ;;  %835 = vrsqrt.f32 %v1280_v8  ;;  %vm449_vm12 = vweird.f32 %v1197_v31 }
  0xb7   : > { %v458_v5 = vmul.f32 %v1234_v52, %v457_v32  ;;  %v434_v6 = vmul.f32 %v834_v57, %v1226_v18  ;;  %709 = vst.msk [vmem:[%s1127_s16 + $0x2c] sm:$0xf] %vm697_vm1, %v676_v60  ;;  %v412_v59 = vsel %vm411_vm9, %v1228_v62, %v408_v27  ;;  %837 = vrsqrt.f32 %v1285_v10  ;;  %vm451_vm13 = vmor %vm449_vm12, %vm450_vm11 }
  0xb8   : > { %708 = vst.msk [vmem:[%s1127_s16 + $0x28] sm:$0xf] %vm697_vm1, %v675_v12  ;;  %v642_v7 = vmul.f32 %v412_v59, %v967_v29  ;;  %v447_v43 = vsub.f32 1.5, %v446_v21  ;;  %839 = vrsqrt.f32 %v1287_v34  ;;  %v1315_v29 = vmax.f32 %v247_v42, 1e-16 }
  0xb9   : > { %v462_v17 = vsel %vm461_vm10, %v1234_v52, %v458_v5  ;;  %v435_v22 = vmul.f32 %v834_v57, %v434_v6  ;;  %v1317_v52 = vmax.f32 %v244_v1, 1e-16  ;;  %vm440_vm14 = vweird.f32 %v834_v57 }
  0xba   : > { %v647_v62 = vmul.f32 %v462_v17, %v979_v36  ;;  %v674_v9 = vpack.c.bf16 %v642_v7, %v642_v7  ;;  %v448_v53 = vmul.f32 %v1254_v19, %v447_v43  ;;  %v1319_v36 = vmax.f32 %v241_v28, 1e-16 }
  0xbb   : > { %v436_v50 = vmul.f32 0.5, %v435_v22  ;;  %841 = vrsqrt.f32 %v1315_v29  ;;  %vm439_vm15 = vweird.f32 %v1226_v18  ;;  %vm489_vm2 = vweird.f32 %v1280_v8 }
  0xbc   : > { %v679_v61 = vpack.c.bf16 %v647_v62, %v647_v62  ;;  %707 = vst.msk [vmem:[%s1127_s16 + $0x24] sm:$0xf] %vm697_vm1, %v674_v9  ;;  %v452_v31 = vsel %vm451_vm13, %v1254_v19, %v448_v53  ;;  %v1324_v58 = vpop.eup %835  ;;  %843 = vrsqrt.f32 %v1317_v52  ;;  %vm441_vm0 = vmor %vm439_vm15, %vm440_vm14  ;;  %vm479_vm3 = vweird.f32 %v1285_v10 }
  0xbd   : > { %v437_v39 = vsub.f32 1.5, %v436_v50  ;;  %v256_v0 = vpop.xlane.xlu2 %255  ;;  %v253_v11 = vpop.xlane.xlu1 %252  ;;  %v646_v24 = vmul.f32 %v452_v31, %v982_v37  ;;  %v484_v19 = vmul.f32 %v1324_v58, %v1280_v8  ;;  %845 = vrsqrt.f32 %v1319_v36 }
  0xbe   : > { %712 = vst.msk [vmem:[%s1127_s16 + $0x38] sm:$0xf] %vm697_vm1, %v679_v61  ;;  %v250_v25 = vpop.xlane.xlu0 %249  ;;  %v1334_v33 = vpop.eup %837  ;;  %v1338_v37 = vmax.f32 %v256_v0, 1e-16  ;;  %vm469_vm4 = vweird.f32 %v1287_v34  ;;  %vm519_vm5 = vweird.f32 %v1315_v29  ;;  %v1355_v48 = vmax.f32 %v253_v11, 1e-16 }
  0xbf   : > { %v438_v2 = vmul.f32 %v834_v57, %v437_v39  ;;  %v678_v13 = vpack.c.bf16 %v646_v24, %v646_v24  ;;  %v1340_v35 = vpop.eup %839  ;;  %v485_v18 = vmul.f32 %v1324_v58, %v484_v19  ;;  %v474_v20 = vmul.f32 %v1334_v33, %v1285_v10 }
  0xc0   : > { %v464_v40 = vmul.f32 %v1340_v35, %v1287_v34  ;;  %847 = vrsqrt.f32 %v1338_v37  ;;  %vm490_vm6 = vweird.f32 %v1324_v58  ;;  %vm480_vm7 = vweird.f32 %v1334_v33 }
  0xc1   : > { %v442_v23 = vsel %vm441_vm0, %v834_v57, %v438_v2  ;;  %711 = vst.msk [vmem:[%s1127_s16 + $0x34] sm:$0xf] %vm697_vm1, %v678_v13  ;;  %v486_v41 = vmul.f32 0.5, %v485_v18  ;;  %v475_v44 = vmul.f32 %v1334_v33, %v474_v20  ;;  %v1357_v32 = vpop.eup %841  ;;  %vm470_vm8 = vweird.f32 %v1340_v35  ;;  %vm491_vm11 = vmor %vm489_vm2, %vm490_vm6 }
  0xc2   : > { %v645_v51 = vmul.f32 %v442_v23, %v985_v38  ;;  %v465_v38 = vmul.f32 %v1340_v35, %v464_v40  ;;  %v1362_v42 = vpop.eup %843  ;;  %v514_v60 = vmul.f32 %v1357_v32, %v1315_v29  ;;  %vm509_vm9 = vweird.f32 %v1317_v52  ;;  %vm481_vm14 = vmor %vm479_vm3, %vm480_vm7 }
  0xc3   : > { %v487_v1 = vsub.f32 1.5, %v486_v41  ;;  %v476_v57 = vmul.f32 0.5, %v475_v44  ;;  %v1369_v28 = vpop.eup %845  ;;  %v504_v5 = vmul.f32 %v1362_v42, %v1317_v52  ;;  %849 = vrsqrt.f32 %v1355_v48  ;;  %vm471_vm15 = vmor %vm469_vm4, %vm470_vm8 }
  0xc4   : > { %v677_v49 = vpack.c.bf16 %v645_v51, %v645_v51  ;;  %v466_v12 = vmul.f32 0.5, %v465_v38  ;;  %v1377_v21 = vmax.f32 %v250_v25, 1e-16  ;;  %v515_v17 = vmul.f32 %v1357_v32, %v514_v60 }
  0xc5   : > { %v1367_v27 = vpop.xlane.xlu1 %261  ;;  %v488_v59 = vmul.f32 %v1324_v58, %v487_v1  ;;  %v477_v7 = vsub.f32 1.5, %v476_v57  ;;  %v494_v43 = vmul.f32 %v1369_v28, %v1319_v36  ;;  %vm499_vm10 = vweird.f32 %v1319_v36  ;;  %v265_v39 = vpop.xlane.xlu2 %264 }
  0xc6   : > { %710 = vst.msk [vmem:[%s1127_s16 + $0x30] sm:$0xf] %vm697_vm1, %v677_v49  ;;  %v1379_v6 = vpop.xlane.xlu0 %258  ;;  %v1386_v22 = vpop.eup %847  ;;  %v467_v62 = vsub.f32 1.5, %v466_v12  ;;  %vm520_vm12 = vweird.f32 %v1357_v32  ;;  %v505_v9 = vmul.f32 %v1362_v42, %v504_v5  ;;  %vm510_vm13 = vweird.f32 %v1362_v42 }
  0xc7   : > { %v492_v53 = vsel %vm491_vm11, %v1324_v58, %v488_v59  ;;  %v478_v50 = vmul.f32 %v1334_v33, %v477_v7  ;;  %v516_v61 = vmul.f32 0.5, %v515_v17  ;;  %v495_v31 = vmul.f32 %v1369_v28, %v494_v43  ;;  %vm521_vm2 = vmor %vm519_vm5, %vm520_vm12 }
  0xc8   : > { %v650_v0 = vmul.f32 %v492_v53, %v997_v45  ;;  %v468_v8 = vmul.f32 %v1340_v35, %v467_v62  ;;  %v506_v11 = vmul.f32 0.5, %v505_v9  ;;  %v544_v24 = vmul.f32 %v1386_v22, %v1338_v37  ;;  %vm511_vm4 = vmor %vm509_vm9, %vm510_vm13 }
  0xc9   : > { %v482_v58 = vsel %vm481_vm14, %v1334_v33, %v478_v50  ;;  %v517_v45 = vsub.f32 1.5, %v516_v61  ;;  %v496_v25 = vmul.f32 0.5, %v495_v31  ;;  %vm500_vm0 = vweird.f32 %v1369_v28  ;;  %v1412_v10 = vpop.eup %849 }
  0xca   : > { %v682_v2 = vpack.c.bf16 %v650_v0, %v650_v0  ;;  %v649_v19 = vmul.f32 %v482_v58, %v1000_v46  ;;  %v472_v13 = vsel %vm471_vm15, %v1340_v35, %v468_v8  ;;  %v507_v23 = vsub.f32 1.5, %v506_v11  ;;  %vm501_vm5 = vmor %vm499_vm10, %vm500_vm0 }
  0xcb   : > { %v648_v18 = vmul.f32 %v472_v13, %v1003_v47  ;;  %v518_v33 = vmul.f32 %v1357_v32, %v517_v45  ;;  %v497_v20 = vsub.f32 1.5, %v496_v25  ;;  %v545_v34 = vmul.f32 %v1386_v22, %v544_v24 }
  0xcc   : > { %715 = vst.msk [vmem:[%s1127_s16 + $0x44] sm:$0xf] %vm697_vm1, %v682_v2  ;;  %v681_v40 = vpack.c.bf16 %v649_v19, %v649_v19  ;;  %v508_v46 = vmul.f32 %v1362_v42, %v507_v23  ;;  %vm549_vm3 = vweird.f32 %v1338_v37  ;;  %v534_v47 = vmul.f32 %v1412_v10, %v1355_v48 }
  0xcd   : > { %v271_v51 = vpop.xlane.xlu1 %270  ;;  %v680_v41 = vpack.c.bf16 %v648_v18, %v648_v18  ;;  %v522_v44 = vsel %vm521_vm2, %v1357_v32, %v518_v33  ;;  %v498_v29 = vmul.f32 %v1369_v28, %v497_v20  ;;  %v546_v49 = vmul.f32 0.5, %v545_v34 }
  0xce   : > { %v268_v35 = vpop.xlane.xlu0 %267  ;;  %714 = vst.msk [vmem:[%s1127_s16 + $0x40] sm:$0xf] %vm697_vm1, %v681_v40  ;;  %v653_v38 = vmul.f32 %v522_v44, %v1015_v54  ;;  %v512_v1 = vsel %vm511_vm4, %v1362_v42, %v508_v46  ;;  %v535_v32 = vmul.f32 %v1412_v10, %v534_v47  ;;  %851 = vrsqrt.f32 %v1377_v21 }
  0xcf   : > { %713 = vst.msk [vmem:[%s1127_s16 + $0x3c] sm:$0xf] %vm697_vm1, %v680_v41  ;;  %v652_v52 = vmul.f32 %v512_v1, %v1018_v55  ;;  %v502_v57 = vsel %vm501_vm5, %v1369_v28, %v498_v29  ;;  %v547_v60 = vsub.f32 1.5, %v546_v49  ;;  %vm550_vm6 = vweird.f32 %v1386_v22  ;;  %v274_v28 = vpop.xlane.xlu2 %273 }
  0xd0   : > { %v685_v54 = vpack.c.bf16 %v653_v38, %v653_v38  ;;  %v651_v42 = vmul.f32 %v502_v57, %v1021_v56  ;;  %v536_v36 = vmul.f32 0.5, %v535_v32  ;;  %v1451_v12 = vmax.f32 %v265_v39, 1e-16  ;;  %vm551_vm7 = vmor %vm549_vm3, %vm550_vm6 }
  0xd1   : > { %v684_v5 = vpack.c.bf16 %v652_v52, %v652_v52  ;;  %v548_v59 = vmul.f32 %v1386_v22, %v547_v60  ;;  %v1455_v7 = vmax.f32 %v1367_v27, 1e-16  ;;  %v1458_v55 = vmax.f32 %v1379_v6, 1e-16 }
  0xd2   : > { %718 = vst.msk [vmem:[%s1127_s16 + $0x50] sm:$0xf] %vm697_vm1, %v685_v54  ;;  %v683_v17 = vpack.c.bf16 %v651_v42, %v651_v42  ;;  %v537_v56 = vsub.f32 1.5, %v536_v36  ;;  %vm540_vm8 = vweird.f32 %v1412_v10  ;;  %853 = vrsqrt.f32 %v1451_v12 }
  0xd3   : > { %717 = vst.msk [vmem:[%s1127_s16 + $0x4c] sm:$0xf] %vm697_vm1, %v684_v5  ;;  %v552_v27 = vsel %vm551_vm7, %v1386_v22, %v548_v59  ;;  %vm539_vm9 = vweird.f32 %v1355_v48  ;;  %855 = vrsqrt.f32 %v1455_v7  ;;  %v1478_v62 = vmax.f32 %v274_v28, 1e-16 }
  0xd4   : > { %v1471_v6 = vpop.eup %851  ;;  %716 = vst.msk [vmem:[%s1127_s16 + $0x48] sm:$0xf] %vm697_vm1, %v683_v17  ;;  %v656_v37 = vmul.f32 %v552_v27, %v1033_v63  ;;  %v538_v43 = vmul.f32 %v1412_v10, %v537_v56  ;;  %857 = vrsqrt.f32 %v1458_v55  ;;  %vm541_vm10 = vmor %vm539_vm9, %vm540_vm8  ;;  %v1482_v48 = vmax.f32 %v271_v51, 1e-16 }
  0xd5   : > { %v524_v22 = vmul.f32 %v1471_v6, %v1377_v21  ;;  %v1484_v9 = vmax.f32 %v268_v35, 1e-16  ;;  %v280_v53 = vpop.xlane.xlu1 %279  ;;  %859 = vrsqrt.f32 %v1478_v62  ;;  %vm529_vm11 = vweird.f32 %v1377_v21 }
  0xd6   : > { %v277_v50 = vpop.xlane.xlu0 %276  ;;  %v688_v61 = vpack.c.bf16 %v656_v37, %v656_v37  ;;  %v542_v63 = vsel %vm541_vm10, %v1412_v10, %v538_v43  ;;  %861 = vrsqrt.f32 %v1482_v48  ;;  %v1497_v8 = vmax.f32 %v280_v53, 1e-16 }
  0xd7   : > { %v655_v31 = vmul.f32 %v542_v63, %v1036_v3  ;;  %v525_v39 = vmul.f32 %v1471_v6, %v524_v22  ;;  %863 = vrsqrt.f32 %v1484_v9  ;;  %v1499_v11 = vmax.f32 %v277_v50, 1e-16 }
  0xd8   : > { %v1491_v0 = vpop.eup %853  ;;  %721 = vst.msk [vmem:[%s1127_s16 + $0x5c] sm:$0xf] %vm697_vm1, %v688_v61  ;;  %vm579_vm12 = vweird.f32 %v1451_v12  ;;  %vm530_vm13 = vweird.f32 %v1471_v6  ;;  %vm569_vm14 = vweird.f32 %v1455_v7  ;;  %865 = vrsqrt.f32 %v1497_v8 }
  0xd9   : > { %v1501_v24 = vpop.eup %855  ;;  %v687_v3 = vpack.c.bf16 %v655_v31, %v655_v31  ;;  %v526_v58 = vmul.f32 0.5, %v525_v39  ;;  %v574_v45 = vmul.f32 %v1491_v0, %v1451_v12  ;;  %vm580_vm15 = vweird.f32 %v1491_v0  ;;  %vm531_vm5 = vmor %vm529_vm11, %vm530_vm13 }
  0xda   : > { %v1506_v25 = vpop.eup %857  ;;  %v564_v10 = vmul.f32 %v1501_v24, %v1455_v7  ;;  %vm559_vm0 = vweird.f32 %v1458_v55  ;;  %vm609_vm2 = vweird.f32 %v1478_v62  ;;  %vm570_vm3 = vweird.f32 %v1501_v24  ;;  %vm581_vm10 = vmor %vm579_vm12, %vm580_vm15 }
  0xdb   : > { %720 = vst.msk [vmem:[%s1127_s16 + $0x58] sm:$0xf] %vm697_vm1, %v687_v3  ;;  %v527_v2 = vsub.f32 1.5, %v526_v58  ;;  %v575_v19 = vmul.f32 %v1491_v0, %v574_v45  ;;  %v554_v13 = vmul.f32 %v1506_v25, %v1458_v55  ;;  %v1521_v23 = vpop.eup %859  ;;  %vm560_vm4 = vweird.f32 %v1506_v25  ;;  %vm571_vm11 = vmor %vm569_vm14, %vm570_vm3  ;;  %v869_v45 = vld [vmem:[%s904_s12 + $0xd8] sm:$0xff] }
  0xdc   : > { %v565_v18 = vmul.f32 %v1501_v24, %v564_v10  ;;  %867 = vrsqrt.f32 %v1499_v11  ;;  %v1527_v33 = vpop.eup %861  ;;  %v604_v40 = vmul.f32 %v1521_v23, %v1478_v62  ;;  %vm610_vm6 = vweird.f32 %v1521_v23  ;;  %vm561_vm12 = vmor %vm559_vm0, %vm560_vm4 }
  0xdd   : > { %v528_v20 = vmul.f32 %v1471_v6, %v527_v2  ;;  %v576_v34 = vmul.f32 0.5, %v575_v19  ;;  %v555_v51 = vmul.f32 %v1506_v25, %v554_v13  ;;  %v1533_v46 = vpop.eup %863  ;;  %v594_v35 = vmul.f32 %v1527_v33, %v1482_v48  ;;  %vm611_vm13 = vmor %vm609_vm2, %vm610_vm6 }
  0xde   : > { %v566_v47 = vmul.f32 0.5, %v565_v18  ;;  %vm599_vm7 = vweird.f32 %v1482_v48  ;;  %vm600_vm8 = vweird.f32 %v1527_v33  ;;  %v605_v49 = vmul.f32 %v1521_v23, %v604_v40  ;;  %v1546_v38 = vpop.eup %865  ;;  %v871_v40 = vld [vmem:[%s904_s12 + $0xf0] sm:$0xff] }
  0xdf   : > { %v532_v41 = vsel %vm531_vm5, %v1471_v6, %v528_v20  ;;  %v577_v44 = vsub.f32 1.5, %v576_v34  ;;  %v556_v29 = vmul.f32 0.5, %v555_v51  ;;  %v595_v32 = vmul.f32 %v1527_v33, %v594_v35  ;;  %vm601_vm14 = vmor %vm599_vm7, %vm600_vm8 }
  0xe0   : > { %v654_v21 = vmul.f32 %v532_v41, %v1039_v4  ;;  %v567_v1 = vsub.f32 1.5, %v566_v47  ;;  %v584_v52 = vmul.f32 %v1533_v46, %v1484_v9  ;;  %v606_v54 = vmul.f32 0.5, %v605_v49 }
  0xe1   : > { %v578_v57 = vmul.f32 %v1491_v0, %v577_v44  ;;  %v557_v60 = vsub.f32 1.5, %v556_v29  ;;  %vm590_vm9 = vweird.f32 %v1533_v46  ;;  %v596_v5 = vmul.f32 0.5, %v595_v32 }
  0xe2   : > { %v1554_v42 = vpop.eup %867  ;;  %v686_v36 = vpack.c.bf16 %v654_v21, %v654_v21  ;;  %v568_v4 = vmul.f32 %v1501_v24, %v567_v1  ;;  %v585_v59 = vmul.f32 %v1533_v46, %v584_v52  ;;  %v607_v56 = vsub.f32 1.5, %v606_v54 }
  0xe3   : > { %v582_v28 = vsel %vm581_vm10, %v1491_v0, %v578_v57  ;;  %v558_v17 = vmul.f32 %v1506_v25, %v557_v60  ;;  %v624_v27 = vmul.f32 %v1546_v38, %v1497_v8  ;;  %v597_v37 = vsub.f32 1.5, %v596_v5 }
  0xe4   : > { %719 = vst.msk [vmem:[%s1127_s16 + $0x54] sm:$0xf] %vm697_vm1, %v686_v36  ;;  %v659_v12 = vmul.f32 %v582_v28, %v1051_v14  ;;  %v572_v6 = vsel %vm571_vm11, %v1501_v24, %v568_v4  ;;  %v586_v7 = vmul.f32 0.5, %v585_v59  ;;  %v608_v53 = vmul.f32 %v1521_v23, %v607_v56 }
  0xe5   : > { %v658_v43 = vmul.f32 %v572_v6, %v1054_v15  ;;  %v562_v22 = vsel %vm561_vm12, %v1506_v25, %v558_v17  ;;  %v625_v50 = vmul.f32 %v1546_v38, %v624_v27  ;;  %v598_v55 = vmul.f32 %v1527_v33, %v597_v37 }
  0xe6   : > { %v691_v14 = vpack.c.bf16 %v659_v12, %v659_v12  ;;  %v657_v61 = vmul.f32 %v562_v22, %v1057_v16  ;;  %v587_v63 = vsub.f32 1.5, %v586_v7  ;;  %v612_v15 = vsel %vm611_vm13, %v1521_v23, %v608_v53 }
  0xe7   : > { %v690_v31 = vpack.c.bf16 %v658_v43, %v658_v43  ;;  %vm589_vm15 = vweird.f32 %v1484_v9  ;;  %v626_v16 = vmul.f32 0.5, %v625_v50  ;;  %v662_v39 = vmul.f32 %v612_v15, %v1069_v26 }
  0xe8   : > { %724 = vst.msk [vmem:[%s1127_s16 + $0x68] sm:$0xf] %vm697_vm1, %v691_v14  ;;  %v689_v62 = vpack.c.bf16 %v657_v61, %v657_v61  ;;  %v602_v0 = vsel %vm601_vm14, %v1527_v33, %v598_v55  ;;  %v588_v24 = vmul.f32 %v1533_v46, %v587_v63  ;;  %vm591_vm0 = vmor %vm589_vm15, %vm590_vm9  ;;  %vm630_vm2 = vweird.f32 %v1546_v38 }
  0xe9   : > { %723 = vst.msk [vmem:[%s1127_s16 + $0x64] sm:$0xf] %vm697_vm1, %v690_v31  ;;  %v661_v3 = vmul.f32 %v602_v0, %v1072_v30  ;;  %v627_v48 = vsub.f32 1.5, %v626_v16  ;;  %v614_v9 = vmul.f32 %v1554_v42, %v1499_v11  ;;  %v694_v26 = vpack.c.bf16 %v662_v39, %v662_v39 }
  0xea   : > { %722 = vst.msk [vmem:[%s1127_s16 + $0x60] sm:$0xf] %vm697_vm1, %v689_v62  ;;  %v592_v58 = vsel %vm591_vm0, %v1533_v46, %v588_v24  ;;  %vm629_vm3 = vweird.f32 %v1497_v8  ;;  %v870_v8 = vld [vmem:[%s904_s12 + $0xf8] sm:$0xff]  ;;  %vm620_vm5 = vweird.f32 %v1554_v42  ;;  %vm619_vm6 = vweird.f32 %v1499_v11 }
  0xeb   : > { %v693_v30 = vpack.c.bf16 %v661_v3, %v661_v3  ;;  %v660_v25 = vmul.f32 %v869_v45, %v592_v58  ;;  %v628_v10 = vmul.f32 %v1546_v38, %v627_v48  ;;  %v615_v2 = vmul.f32 %v1554_v42, %v614_v9  ;;  %727 = vst.msk [vmem:[%s1127_s16 + $0x74] sm:$0xf] %vm697_vm1, %v694_v26  ;;  %vm631_vm4 = vmor %vm629_vm3, %vm630_vm2 }
  0xec   : > { %vm621_vm7 = vmor %vm619_vm6, %vm620_vm5 }
  0xed   : > { %726 = vst.msk [vmem:[%s1127_s16 + $0x70] sm:$0xf] %vm697_vm1, %v693_v30  ;;  %v692_v19 = vpack.c.bf16 %v660_v25, %v660_v25  ;;  %v632_v13 = vsel %vm631_vm4, %v1546_v38, %v628_v10  ;;  %v616_v23 = vmul.f32 0.5, %v615_v2 }
  0xee   : > { %v664_v18 = vmul.f32 %v870_v8, %v632_v13 }
  0xef   : > { %725 = vst.msk [vmem:[%s1127_s16 + $0x6c] sm:$0xf] %vm697_vm1, %v692_v19  ;;  %v617_v33 = vsub.f32 1.5, %v616_v23 }
  0xf0   : > { %v696_v20 = vpack.c.bf16 %v664_v18, %v664_v18 }
  0xf1   : > { %v618_v34 = vmul.f32 %v1554_v42, %v617_v33 }
  0xf2   : > { %729 = vst.msk [vmem:[%s1127_s16 + $0x7c] sm:$0xf] %vm697_vm1, %v696_v20 }
  0xf3   : > { %v622_v51 = vsel %vm621_vm7, %v1554_v42, %v618_v34 }
  0xf4   : > { %v663_v46 = vmul.f32 %v871_v40, %v622_v51 }
  0xf6   : > { %v695_v47 = vpack.c.bf16 %v663_v46, %v663_v46 }
  0xf8   : > { %728 = vst.msk [vmem:[%s1127_s16 + $0x78] sm:$0xf] %vm697_vm1, %v695_v47 }
  0xf9 PF: > { %s11_s6 = sadd.s32 1, %s878_s6  }
  0xfa   : > { %p8_p4 = scmp.ge.s32.totalorder %s11_s6, 4  }
  0xfc   :  { %10 = sbr.rel (!%p8_p4) target bundleno = 1 (0x1), region = 54 }

</bundles_post_ra>
